<compile_context>
chip_gen: v7x
topology: tpu7x:2x2x1
jax: 0.10.0
libtpu: 0.0.40
codegen_flags: <defaults>
</compile_context>

<pallas_src>
import math
import numpy as np

import jax
import jax.numpy as jnp
from jax import lax
from jax.experimental import pallas as pl
from jax.experimental.pallas import tpu as pltpu

# ----------------------------- configuration ------------------------------
N            = 2     # PyTorch batch N -> LSTM time axis (batch_first=False)
SEQ          = 8     # sequence length -> LSTM batch axis
INPUT_DIMS   = 32
HIDDEN_DIMS  = 32    # == INPUT_DIMS  => no input_up_proj
OUTPUT_DIMS  = 16    # != HIDDEN_DIMS => output_down_proj is used
HIDDEN_T_DIM = 32    # time_embed_dim = 4 * HIDDEN_T_DIM = 128
NUM_LAYERS   = 3
LN_EPS       = 1e-6  # nn.LayerNorm(hidden_dims, eps=1e-06) in the module
OUT_PAD      = 128   # lane-dense padded output width

TS    = N * SEQ            # 16 flattened (time * lstm-batch) rows
H     = HIDDEN_DIMS
G4    = 4 * HIDDEN_DIMS    # 128 fused gate lanes (i|f|g|o)
TEDIM = 4 * HIDDEN_T_DIM   # 128 time-embed hidden width

VMEM_SPEC = pl.BlockSpec(memory_space=pltpu.MemorySpace.VMEM)


# ------------------------------ glue (JAX) --------------------------------
def timestep_embedding(timesteps, dim, max_period=10000):
    """Sinusoidal timestep embedding (guided-diffusion / diffuseq convention)."""
    half = dim // 2
    freqs = jnp.exp(
        -math.log(max_period) * jnp.arange(half, dtype=jnp.float32) / half
    )
    args = timesteps.astype(jnp.float32)[:, None] * freqs[None, :]
    emb = jnp.concatenate([jnp.cos(args), jnp.sin(args)], axis=-1)
    if dim % 2:
        emb = jnp.concatenate([emb, jnp.zeros_like(emb[:, :1])], axis=-1)
    return emb


# ------------------------------ fused kernel ------------------------------
def fused_kernel(xs_ref, w128_ref, w32_ref, b_ref, o_ref):
    """time_embed MLP + LayerNorm -> 3-layer LSTM (unrolled) -> down_proj.

    xs_ref:   (2*TS, H)    rows 0..TS-1 = x flattened (time-major),
                           rows TS..2TS-1 = per-row sinusoidal timestep emb
    w128_ref: (8, H, 128)  [te_w1, wih_0, whh_0, wih_1, whh_1, wih_2, whh_2,
                            dp_w2 zero-padded to 128 lanes]
    w32_ref:  (160, H)     rows 0..127 = te_w2, rows 128..159 = dp_w1
    b_ref:    (9, 128)     [te_b1, te_b2, ln_g, ln_b, lstm_b0..2, dp_b1, dp_b2]
                           (LSTM biases = bih+bhh pre-summed, gate-fused)
    o_ref:    (TS, 128)    lane-dense padded output
    """
    x = xs_ref[0:TS, :]            # (16, 32)
    sin_emb = xs_ref[TS:2 * TS, :]  # (16, 32) per-row sinusoid (already broadcast)

    # ---- prologue: time-embed MLP (Linear -> SiLU -> Linear) ----
    h1 = jnp.dot(sin_emb, w128_ref[0],
                 preferred_element_type=jnp.float32) + b_ref[0:1, :]   # (16,128)
    h1 = h1 * jax.nn.sigmoid(h1)                                       # SiLU
    emb_t = jnp.dot(h1, w32_ref[0:TEDIM, :],
                    preferred_element_type=jnp.float32) + b_ref[1:2, :H]  # (16,32)

    # emb_x + emb_t ; LayerNorm (biased var, eps=1e-6) ; dropout(p=0) = identity
    y = x + emb_t
    mean = jnp.mean(y, axis=-1, keepdims=True)
    var = jnp.mean(jnp.square(y - mean), axis=-1, keepdims=True)
    y = (y - mean) * lax.rsqrt(var + LN_EPS)
    cur = y * b_ref[2:3, :H] + b_ref[3:4, :H]                          # (16,32)

    # static lane mask selecting the g gate (lanes 2H..3H-1), hoisted
    lane = lax.broadcasted_iota(jnp.int32, (SEQ, G4), 1)
    g_mask = (lane >= 2 * H) & (lane < 3 * H)

    # ---- 3-layer LSTM, time loop fully unrolled, carries kept in values ----
    for l in range(NUM_LAYERS):
        wih = w128_ref[1 + 2 * l]          # (32,128) fused i|f|g|o
        whh = w128_ref[2 + 2 * l]          # (32,128) fused i|f|g|o
        b = b_ref[4 + l:5 + l, :]          # (1,128)  bih+bhh fused

        # Hoisted input projection: ONE lane-dense (16,32)@(32,128) matmul,
        # bias folded in.  Not on the recurrence carry chain.
        gx = jnp.dot(cur, wih, preferred_element_type=jnp.float32) + b  # (16,128)

        hs = []
        h = None
        c = None
        for t in range(N):                 # T = 2, unrolled
            pre = gx[t * SEQ:(t + 1) * SEQ, :]   # (8,128) static aligned slice
            if t > 0:
                # ONE lane-dense recurrent matmul per step (was 4).
                pre = pre + jnp.dot(h, whh, preferred_element_type=jnp.float32)
            # Fused activations: 2 full-vreg EUP passes + one select.
            act = jnp.where(g_mask, jnp.tanh(pre), jax.nn.sigmoid(pre))  # (8,128)
            i_g = act[:, 0:H]
            f_g = act[:, H:2 * H]
            g_g = act[:, 2 * H:3 * H]
            o_g = act[:, 3 * H:4 * H]
            if t == 0:
                c = i_g * g_g              # h0 = c0 = 0: f*c term vanishes
            else:
                c = f_g * c + i_g * g_g
            h = o_g * jnp.tanh(c)
            hs.append(h)
        # Two 8-sublane-tile-aligned pieces -> register-level stack, no relayout.
        cur = jnp.concatenate(hs, axis=0)  # (16,32)

    # ---- epilogue: output_down_proj (Linear -> Tanh -> Linear), one store ----
    z = jnp.tanh(jnp.dot(cur, w32_ref[TEDIM:TEDIM + H, :],
                         preferred_element_type=jnp.float32) + b_ref[7:8, :H])
    out = jnp.dot(z, w128_ref[1 + 2 * NUM_LAYERS],
                  preferred_element_type=jnp.float32) + b_ref[8:9, :]
    o_ref[...] = out.astype(o_ref.dtype)   # (16,128) single unmasked store


# ------------------------------- parameters -------------------------------
def init_params(key):
    td, te, Hd, D, Od, L = (HIDDEN_T_DIM, TEDIM, HIDDEN_DIMS,
                            INPUT_DIMS, OUTPUT_DIMS, NUM_LAYERS)
    ks = jax.random.split(key, 12)
    s = 0.1
    p = {
        # time_embed: Linear(td, 4td) -> SiLU -> Linear(4td, H)   (input-major)
        "te_w1": jax.random.normal(ks[0], (td, te), jnp.float32) * s,
        "te_b1": jax.random.normal(ks[1], (1, te), jnp.float32) * s,
        "te_w2": jax.random.normal(ks[2], (te, Hd), jnp.float32) * s,
        "te_b2": jax.random.normal(ks[3], (1, Hd), jnp.float32) * s,
        # LayerNorm (PyTorch default init: gamma=1, beta=0)
        "ln_g": jnp.ones((1, Hd), jnp.float32),
        "ln_b": jnp.zeros((1, Hd), jnp.float32),
        # LSTM per-gate weights (input-major; gate order i,f,g,o on axis 1)
        "wih": jax.random.normal(ks[4], (L, 4, D, Hd), jnp.float32) * s,
        "whh": jax.random.normal(ks[5], (L, 4, Hd, Hd), jnp.float32) * s,
        "bih": jax.random.normal(ks[6], (L, 4, 1, Hd), jnp.float32) * s,
        "bhh": jax.random.normal(ks[7], (L, 4, 1, Hd), jnp.float32) * s,
        # output_down_proj: Linear(H,H) -> Tanh -> Linear(H, Od)
        "dp_w1": jax.random.normal(ks[8], (Hd, Hd), jnp.float32) * s,
        "dp_b1": jax.random.normal(ks[9], (1, Hd), jnp.float32) * s,
        "dp_w2": jax.random.normal(ks[10], (Hd, Od), jnp.float32) * s,
        "dp_b2": jax.random.normal(ks[11], (1, Od), jnp.float32) * s,
    }
    return p


def prepare_params(params):
    """One-time weight packing (hoisted out of the per-call forward path)."""
    L = NUM_LAYERS

    def pad128(v):
        v = jnp.asarray(v, jnp.float32).reshape(-1)
        return jnp.zeros((OUT_PAD,), jnp.float32).at[:v.shape[0]].set(v)

    # fused lane-dense LSTM weights: (L, 32, 128) with gate order i|f|g|o
    wih_f = params["wih"].transpose(0, 2, 1, 3).reshape(L, INPUT_DIMS, G4)
    whh_f = params["whh"].transpose(0, 2, 1, 3).reshape(L, H, G4)
    b_f = (params["bih"] + params["bhh"]).transpose(0, 2, 1, 3).reshape(L, G4)

    # lane-pad down_proj output weights with zeros -> single unmasked store
    dp_w2p = jnp.zeros((H, OUT_PAD), jnp.float32).at[:, :OUTPUT_DIMS].set(
        params["dp_w2"])

    blocks = [params["te_w1"]]
    for l in range(L):
        blocks += [wih_f[l], whh_f[l]]
    blocks += [dp_w2p]
    w128 = jnp.stack(blocks, axis=0)                               # (8,32,128)

    w32 = jnp.concatenate([params["te_w2"], params["dp_w1"]], 0)   # (160,32)

    bvec = jnp.stack([
        pad128(params["te_b1"]),   # 0
        pad128(params["te_b2"]),   # 1
        pad128(params["ln_g"]),    # 2
        pad128(params["ln_b"]),    # 3
        pad128(b_f[0]),            # 4
        pad128(b_f[1]),            # 5
        pad128(b_f[2]),            # 6
        pad128(params["dp_b1"]),   # 7
        pad128(params["dp_b2"]),   # 8
    ], axis=0)                                                     # (9,128)

    return {"w128": w128, "w32": w32, "bvec": bvec}


# ------------------------------ forward pass ------------------------------
@jax.jit
def pallas_forward(prepped, x, timesteps):
    Nb, S, _ = x.shape
    # Tiny fused prologue (sin/cos + row broadcast + pack); the heavy
    # time_embed MLP runs inside the kernel.
    sin_emb = timestep_embedding(timesteps, HIDDEN_T_DIM)          # (N, 32)
    sin_rows = jnp.repeat(sin_emb, S, axis=0)                      # (N*S, 32)
    x_flat = x.reshape(Nb * S, INPUT_DIMS).astype(jnp.float32)
    xs = jnp.concatenate([x_flat, sin_rows], axis=0)               # (2*N*S, 32)

    out_pad = pl.pallas_call(
        fused_kernel,
        out_shape=jax.ShapeDtypeStruct((Nb * S, OUT_PAD), jnp.float32),
        in_specs=[VMEM_SPEC] * 4,
        out_specs=VMEM_SPEC,
    )(xs, prepped["w128"], prepped["w32"], prepped["bvec"])

    out = out_pad[:, :OUTPUT_DIMS].reshape(Nb, S, OUTPUT_DIMS)     # glue slice
    return out.astype(x.dtype)                                     # h.type(x.dtype)


# --------------------------- pure-JAX reference ----------------------------
def reference_forward(params, x, timesteps):
    hp = lax.Precision.HIGHEST
    sin_emb = timestep_embedding(timesteps, HIDDEN_T_DIM)
    h1 = jnp.dot(sin_emb, params["te_w1"], precision=hp) + params["te_b1"]
    h1 = h1 * jax.nn.sigmoid(h1)
    emb_t = jnp.dot(h1, params["te_w2"], precision=hp) + params["te_b2"]
    y = x + emb_t[:, None, :]
    mean = y.mean(-1, keepdims=True)
    var = ((y - mean) ** 2).mean(-1, keepdims=True)
    y = (y - mean) / jnp.sqrt(var + LN_EPS) * params["ln_g"][0] + params["ln_b"][0]

    T, B, Hd = y.shape
    inp = y
    for l in range(NUM_LAYERS):
        h = jnp.zeros((B, Hd), jnp.float32)
        c = jnp.zeros((B, Hd), jnp.float32)
        hs = []
        for t in range(T):
            pre = [jnp.dot(inp[t], params["wih"][l, g], precision=hp)
                   + jnp.dot(h, params["whh"][l, g], precision=hp)
                   + params["bih"][l, g] + params["bhh"][l, g]
                   for g in range(4)]
            i_g = jax.nn.sigmoid(pre[0])
            f_g = jax.nn.sigmoid(pre[1])
            g_g = jnp.tanh(pre[2])
            o_g = jax.nn.sigmoid(pre[3])
            c = f_g * c + i_g * g_g
            h = o_g * jnp.tanh(c)
            hs.append(h)
        inp = jnp.stack(hs, axis=0)

    z = jnp.tanh(jnp.dot(inp.reshape(T * B, Hd), params["dp_w1"], precision=hp)
                 + params["dp_b1"])
    out = jnp.dot(z, params["dp_w2"], precision=hp) + params["dp_b2"]
    return out.reshape(T, B, OUTPUT_DIMS).astype(x.dtype)


# ---------------------------------- main -----------------------------------
if __name__ == "__main__":
    key = jax.random.PRNGKey(0)
    kx, kt = jax.random.split(key)
    x = jax.random.normal(kx, (N, SEQ, INPUT_DIMS), jnp.float32)
    timesteps = jax.random.randint(kt, (N,), 0, 1000)

    params = init_params(jax.random.PRNGKey(42))
    prepped = prepare_params(params)          # one-time weight packing

    out = pallas_forward(prepped, x, timesteps)
    out = jax.block_until_ready(out)

    ref = reference_forward(params, x, timesteps)
    assert out.shape == (N, SEQ, OUTPUT_DIMS), out.shape
    assert out.dtype == x.dtype
    np.testing.assert_allclose(np.asarray(out), np.asarray(ref),
                               rtol=1e-3, atol=1e-3)
    print("KERNEL_OK")
</pallas_src>

<mosaic_0001>
module attributes {stable_mosaic.version = 11 : i64} {
  func.func @fused_kernel(%arg0: memref<32x32xf32, #tpu.memory_space<vmem>>, %arg1: memref<8x32x128xf32, #tpu.memory_space<vmem>>, %arg2: memref<160x32xf32, #tpu.memory_space<vmem>>, %arg3: memref<9x128xf32, #tpu.memory_space<vmem>>, %arg4: memref<16x128xf32, #tpu.memory_space<vmem>>) attributes {dimension_semantics = [], scalar_prefetch = 0 : i64, scratch_operands = 0 : i64, tpu.core_type = #tpu.core_type<tc>} {
    %c0 = arith.constant 0 : index
    %c0_0 = arith.constant 0 : index
    %0 = vector.load %arg0[%c0, %c0_0] : memref<32x32xf32, #tpu.memory_space<vmem>>, vector<16x32xf32>
    %c16 = arith.constant 16 : index
    %c0_1 = arith.constant 0 : index
    %1 = vector.load %arg0[%c16, %c0_1] : memref<32x32xf32, #tpu.memory_space<vmem>>, vector<16x32xf32>
    %c0_2 = arith.constant 0 : index
    %c0_3 = arith.constant 0 : index
    %c0_4 = arith.constant 0 : index
    %2 = vector.load %arg1[%c0_2, %c0_3, %c0_4] : memref<8x32x128xf32, #tpu.memory_space<vmem>>, vector<1x32x128xf32>
    %3 = vector.shape_cast %2 : vector<1x32x128xf32> to vector<32x128xf32>
    %cst = arith.constant dense<0.000000e+00> : vector<16x128xf32>
    %4 = tpu.matmul %1, %3, %cst {dimension_numbers = #tpu.dot_dimension_numbers<[1], [0], [0], [1], [0, 0, 1, 1], [], []>} : vector<16x32xf32>, vector<32x128xf32>, vector<16x128xf32> -> vector<16x128xf32>
    %c0_5 = arith.constant 0 : index
    %c0_6 = arith.constant 0 : index
    %5 = vector.load %arg3[%c0_5, %c0_6] : memref<9x128xf32, #tpu.memory_space<vmem>>, vector<1x128xf32>
    %6 = vector.broadcast %5 : vector<1x128xf32> to vector<16x128xf32>
    %7 = arith.addf %4, %6 : vector<16x128xf32>
    %8 = arith.negf %7 : vector<16x128xf32>
    %9 = math.exp %8 : vector<16x128xf32>
    %cst_7 = arith.constant 1.000000e+00 : f32
    %10 = vector.broadcast %cst_7 : f32 to vector<16x128xf32>
    %11 = arith.addf %10, %9 : vector<16x128xf32>
    %12 = arith.divf %10, %11 : vector<16x128xf32>
    %13 = arith.mulf %7, %12 : vector<16x128xf32>
    %c0_8 = arith.constant 0 : index
    %c0_9 = arith.constant 0 : index
    %14 = vector.load %arg2[%c0_8, %c0_9] : memref<160x32xf32, #tpu.memory_space<vmem>>, vector<128x32xf32>
    %cst_10 = arith.constant dense<0.000000e+00> : vector<16x32xf32>
    %15 = tpu.matmul %13, %14, %cst_10 {dimension_numbers = #tpu.dot_dimension_numbers<[1], [0], [0], [1], [0, 0, 1, 1], [], []>} : vector<16x128xf32>, vector<128x32xf32>, vector<16x32xf32> -> vector<16x32xf32>
    %c1 = arith.constant 1 : index
    %c0_11 = arith.constant 0 : index
    %16 = vector.load %arg3[%c1, %c0_11] : memref<9x128xf32, #tpu.memory_space<vmem>>, vector<1x32xf32>
    %17 = vector.broadcast %16 : vector<1x32xf32> to vector<16x32xf32>
    %18 = arith.addf %15, %17 : vector<16x32xf32>
    %19 = arith.addf %0, %18 : vector<16x32xf32>
    %cst_12 = arith.constant dense<0.000000e+00> : vector<16xf32>
    %20 = vector.multi_reduction <add>, %19, %cst_12 [1] : vector<16x32xf32> to vector<16xf32>
    %21 = vector.shape_cast %20 : vector<16xf32> to vector<16x1xf32>
    %cst_13 = arith.constant 3.200000e+01 : f32
    %22 = vector.broadcast %cst_13 : f32 to vector<16x1xf32>
    %23 = arith.divf %21, %22 : vector<16x1xf32>
    %24 = vector.broadcast %23 : vector<16x1xf32> to vector<16x32xf32>
    %25 = arith.subf %19, %24 : vector<16x32xf32>
    %26 = arith.mulf %25, %25 : vector<16x32xf32>
    %cst_14 = arith.constant dense<0.000000e+00> : vector<16xf32>
    %27 = vector.multi_reduction <add>, %26, %cst_14 [1] : vector<16x32xf32> to vector<16xf32>
    %28 = vector.shape_cast %27 : vector<16xf32> to vector<16x1xf32>
    %cst_15 = arith.constant 3.200000e+01 : f32
    %29 = vector.broadcast %cst_15 : f32 to vector<16x1xf32>
    %30 = arith.divf %28, %29 : vector<16x1xf32>
    %31 = vector.broadcast %23 : vector<16x1xf32> to vector<16x32xf32>
    %32 = arith.subf %19, %31 : vector<16x32xf32>
    %cst_16 = arith.constant 9.99999997E-7 : f32
    %33 = vector.broadcast %cst_16 : f32 to vector<16x1xf32>
    %34 = arith.addf %30, %33 : vector<16x1xf32>
    %35 = math.rsqrt %34 : vector<16x1xf32>
    %36 = vector.broadcast %35 : vector<16x1xf32> to vector<16x32xf32>
    %37 = arith.mulf %32, %36 : vector<16x32xf32>
    %c2 = arith.constant 2 : index
    %c0_17 = arith.constant 0 : index
    %38 = vector.load %arg3[%c2, %c0_17] : memref<9x128xf32, #tpu.memory_space<vmem>>, vector<1x32xf32>
    %39 = vector.broadcast %38 : vector<1x32xf32> to vector<16x32xf32>
    %40 = arith.mulf %37, %39 : vector<16x32xf32>
    %c3 = arith.constant 3 : index
    %c0_18 = arith.constant 0 : index
    %41 = vector.load %arg3[%c3, %c0_18] : memref<9x128xf32, #tpu.memory_space<vmem>>, vector<1x32xf32>
    %42 = vector.broadcast %41 : vector<1x32xf32> to vector<16x32xf32>
    %43 = arith.addf %40, %42 : vector<16x32xf32>
    %44 = tpu.iota {dimensions = array<i32: 1>} : vector<8x128xi32>
    %c64_i32 = arith.constant 64 : i32
    %45 = vector.broadcast %c64_i32 : i32 to vector<8x128xi32>
    %46 = arith.cmpi sge, %44, %45 : vector<8x128xi32>
    %c96_i32 = arith.constant 96 : i32
    %47 = vector.broadcast %c96_i32 : i32 to vector<8x128xi32>
    %48 = arith.cmpi slt, %44, %47 : vector<8x128xi32>
    %49 = arith.andi %46, %48 : vector<8x128xi1>
    %c1_19 = arith.constant 1 : index
    %c0_20 = arith.constant 0 : index
    %c0_21 = arith.constant 0 : index
    %50 = vector.load %arg1[%c1_19, %c0_20, %c0_21] : memref<8x32x128xf32, #tpu.memory_space<vmem>>, vector<1x32x128xf32>
    %51 = vector.shape_cast %50 : vector<1x32x128xf32> to vector<32x128xf32>
    %c2_22 = arith.constant 2 : index
    %c0_23 = arith.constant 0 : index
    %c0_24 = arith.constant 0 : index
    %52 = vector.load %arg1[%c2_22, %c0_23, %c0_24] : memref<8x32x128xf32, #tpu.memory_space<vmem>>, vector<1x32x128xf32>
    %53 = vector.shape_cast %52 : vector<1x32x128xf32> to vector<32x128xf32>
    %c4 = arith.constant 4 : index
    %c0_25 = arith.constant 0 : index
    %54 = vector.load %arg3[%c4, %c0_25] : memref<9x128xf32, #tpu.memory_space<vmem>>, vector<1x128xf32>
    %cst_26 = arith.constant dense<0.000000e+00> : vector<16x128xf32>
    %55 = tpu.matmul %43, %51, %cst_26 {dimension_numbers = #tpu.dot_dimension_numbers<[1], [0], [0], [1], [0, 0, 1, 1], [], []>} : vector<16x32xf32>, vector<32x128xf32>, vector<16x128xf32> -> vector<16x128xf32>
    %56 = vector.broadcast %54 : vector<1x128xf32> to vector<16x128xf32>
    %57 = arith.addf %55, %56 : vector<16x128xf32>
    %58 = vector.extract_strided_slice %57 {offsets = [0, 0], sizes = [8, 128], strides = [1, 1]} : vector<16x128xf32> to vector<8x128xf32>
    %59 = math.tanh %58 : vector<8x128xf32>
    %60 = arith.negf %58 : vector<8x128xf32>
    %61 = math.exp %60 : vector<8x128xf32>
    %cst_27 = arith.constant 1.000000e+00 : f32
    %62 = vector.broadcast %cst_27 : f32 to vector<8x128xf32>
    %63 = arith.addf %62, %61 : vector<8x128xf32>
    %64 = arith.divf %62, %63 : vector<8x128xf32>
    %65 = arith.select %49, %59, %64 : vector<8x128xi1>, vector<8x128xf32>
    %66 = vector.extract_strided_slice %65 {offsets = [0, 0], sizes = [8, 32], strides = [1, 1]} : vector<8x128xf32> to vector<8x32xf32>
    %67 = vector.extract_strided_slice %65 {offsets = [0, 64], sizes = [8, 32], strides = [1, 1]} : vector<8x128xf32> to vector<8x32xf32>
    %68 = vector.extract_strided_slice %65 {offsets = [0, 96], sizes = [8, 32], strides = [1, 1]} : vector<8x128xf32> to vector<8x32xf32>
    %69 = arith.mulf %66, %67 : vector<8x32xf32>
    %70 = math.tanh %69 : vector<8x32xf32>
    %71 = arith.mulf %68, %70 : vector<8x32xf32>
    %72 = vector.extract_strided_slice %57 {offsets = [8, 0], sizes = [8, 128], strides = [1, 1]} : vector<16x128xf32> to vector<8x128xf32>
    %cst_28 = arith.constant dense<0.000000e+00> : vector<8x128xf32>
    %73 = tpu.matmul %71, %53, %cst_28 {dimension_numbers = #tpu.dot_dimension_numbers<[1], [0], [0], [1], [0, 0, 1, 1], [], []>} : vector<8x32xf32>, vector<32x128xf32>, vector<8x128xf32> -> vector<8x128xf32>
    %74 = arith.addf %72, %73 : vector<8x128xf32>
    %75 = math.tanh %74 : vector<8x128xf32>
    %76 = arith.negf %74 : vector<8x128xf32>
    %77 = math.exp %76 : vector<8x128xf32>
    %cst_29 = arith.constant 1.000000e+00 : f32
    %78 = vector.broadcast %cst_29 : f32 to vector<8x128xf32>
    %79 = arith.addf %78, %77 : vector<8x128xf32>
    %80 = arith.divf %78, %79 : vector<8x128xf32>
    %81 = arith.select %49, %75, %80 : vector<8x128xi1>, vector<8x128xf32>
    %82 = vector.extract_strided_slice %81 {offsets = [0, 0], sizes = [8, 32], strides = [1, 1]} : vector<8x128xf32> to vector<8x32xf32>
    %83 = vector.extract_strided_slice %81 {offsets = [0, 32], sizes = [8, 32], strides = [1, 1]} : vector<8x128xf32> to vector<8x32xf32>
    %84 = vector.extract_strided_slice %81 {offsets = [0, 64], sizes = [8, 32], strides = [1, 1]} : vector<8x128xf32> to vector<8x32xf32>
    %85 = vector.extract_strided_slice %81 {offsets = [0, 96], sizes = [8, 32], strides = [1, 1]} : vector<8x128xf32> to vector<8x32xf32>
    %86 = arith.mulf %83, %69 : vector<8x32xf32>
    %87 = arith.mulf %82, %84 : vector<8x32xf32>
    %88 = arith.addf %86, %87 : vector<8x32xf32>
    %89 = math.tanh %88 : vector<8x32xf32>
    %90 = arith.mulf %85, %89 : vector<8x32xf32>
    %91 = tpu.concatenate %71, %90 in 0 : vector<8x32xf32>, vector<8x32xf32> -> vector<16x32xf32>
    %c3_30 = arith.constant 3 : index
    %c0_31 = arith.constant 0 : index
    %c0_32 = arith.constant 0 : index
    %92 = vector.load %arg1[%c3_30, %c0_31, %c0_32] : memref<8x32x128xf32, #tpu.memory_space<vmem>>, vector<1x32x128xf32>
    %93 = vector.shape_cast %92 : vector<1x32x128xf32> to vector<32x128xf32>
    %c4_33 = arith.constant 4 : index
    %c0_34 = arith.constant 0 : index
    %c0_35 = arith.constant 0 : index
    %94 = vector.load %arg1[%c4_33, %c0_34, %c0_35] : memref<8x32x128xf32, #tpu.memory_space<vmem>>, vector<1x32x128xf32>
    %95 = vector.shape_cast %94 : vector<1x32x128xf32> to vector<32x128xf32>
    %c5 = arith.constant 5 : index
    %c0_36 = arith.constant 0 : index
    %96 = vector.load %arg3[%c5, %c0_36] : memref<9x128xf32, #tpu.memory_space<vmem>>, vector<1x128xf32>
    %cst_37 = arith.constant dense<0.000000e+00> : vector<16x128xf32>
    %97 = tpu.matmul %91, %93, %cst_37 {dimension_numbers = #tpu.dot_dimension_numbers<[1], [0], [0], [1], [0, 0, 1, 1], [], []>} : vector<16x32xf32>, vector<32x128xf32>, vector<16x128xf32> -> vector<16x128xf32>
    %98 = vector.broadcast %96 : vector<1x128xf32> to vector<16x128xf32>
    %99 = arith.addf %97, %98 : vector<16x128xf32>
    %100 = vector.extract_strided_slice %99 {offsets = [0, 0], sizes = [8, 128], strides = [1, 1]} : vector<16x128xf32> to vector<8x128xf32>
    %101 = math.tanh %100 : vector<8x128xf32>
    %102 = arith.negf %100 : vector<8x128xf32>
    %103 = math.exp %102 : vector<8x128xf32>
    %cst_38 = arith.constant 1.000000e+00 : f32
    %104 = vector.broadcast %cst_38 : f32 to vector<8x128xf32>
    %105 = arith.addf %104, %103 : vector<8x128xf32>
    %106 = arith.divf %104, %105 : vector<8x128xf32>
    %107 = arith.select %49, %101, %106 : vector<8x128xi1>, vector<8x128xf32>
    %108 = vector.extract_strided_slice %107 {offsets = [0, 0], sizes = [8, 32], strides = [1, 1]} : vector<8x128xf32> to vector<8x32xf32>
    %109 = vector.extract_strided_slice %107 {offsets = [0, 64], sizes = [8, 32], strides = [1, 1]} : vector<8x128xf32> to vector<8x32xf32>
    %110 = vector.extract_strided_slice %107 {offsets = [0, 96], sizes = [8, 32], strides = [1, 1]} : vector<8x128xf32> to vector<8x32xf32>
    %111 = arith.mulf %108, %109 : vector<8x32xf32>
    %112 = math.tanh %111 : vector<8x32xf32>
    %113 = arith.mulf %110, %112 : vector<8x32xf32>
    %114 = vector.extract_strided_slice %99 {offsets = [8, 0], sizes = [8, 128], strides = [1, 1]} : vector<16x128xf32> to vector<8x128xf32>
    %cst_39 = arith.constant dense<0.000000e+00> : vector<8x128xf32>
    %115 = tpu.matmul %113, %95, %cst_39 {dimension_numbers = #tpu.dot_dimension_numbers<[1], [0], [0], [1], [0, 0, 1, 1], [], []>} : vector<8x32xf32>, vector<32x128xf32>, vector<8x128xf32> -> vector<8x128xf32>
    %116 = arith.addf %114, %115 : vector<8x128xf32>
    %117 = math.tanh %116 : vector<8x128xf32>
    %118 = arith.negf %116 : vector<8x128xf32>
    %119 = math.exp %118 : vector<8x128xf32>
    %cst_40 = arith.constant 1.000000e+00 : f32
    %120 = vector.broadcast %cst_40 : f32 to vector<8x128xf32>
    %121 = arith.addf %120, %119 : vector<8x128xf32>
    %122 = arith.divf %120, %121 : vector<8x128xf32>
    %123 = arith.select %49, %117, %122 : vector<8x128xi1>, vector<8x128xf32>
    %124 = vector.extract_strided_slice %123 {offsets = [0, 0], sizes = [8, 32], strides = [1, 1]} : vector<8x128xf32> to vector<8x32xf32>
    %125 = vector.extract_strided_slice %123 {offsets = [0, 32], sizes = [8, 32], strides = [1, 1]} : vector<8x128xf32> to vector<8x32xf32>
    %126 = vector.extract_strided_slice %123 {offsets = [0, 64], sizes = [8, 32], strides = [1, 1]} : vector<8x128xf32> to vector<8x32xf32>
    %127 = vector.extract_strided_slice %123 {offsets = [0, 96], sizes = [8, 32], strides = [1, 1]} : vector<8x128xf32> to vector<8x32xf32>
    %128 = arith.mulf %125, %111 : vector<8x32xf32>
    %129 = arith.mulf %124, %126 : vector<8x32xf32>
    %130 = arith.addf %128, %129 : vector<8x32xf32>
    %131 = math.tanh %130 : vector<8x32xf32>
    %132 = arith.mulf %127, %131 : vector<8x32xf32>
    %133 = tpu.concatenate %113, %132 in 0 : vector<8x32xf32>, vector<8x32xf32> -> vector<16x32xf32>
    %c5_41 = arith.constant 5 : index
    %c0_42 = arith.constant 0 : index
    %c0_43 = arith.constant 0 : index
    %134 = vector.load %arg1[%c5_41, %c0_42, %c0_43] : memref<8x32x128xf32, #tpu.memory_space<vmem>>, vector<1x32x128xf32>
    %135 = vector.shape_cast %134 : vector<1x32x128xf32> to vector<32x128xf32>
    %c6 = arith.constant 6 : index
    %c0_44 = arith.constant 0 : index
    %c0_45 = arith.constant 0 : index
    %136 = vector.load %arg1[%c6, %c0_44, %c0_45] : memref<8x32x128xf32, #tpu.memory_space<vmem>>, vector<1x32x128xf32>
    %137 = vector.shape_cast %136 : vector<1x32x128xf32> to vector<32x128xf32>
    %c6_46 = arith.constant 6 : index
    %c0_47 = arith.constant 0 : index
    %138 = vector.load %arg3[%c6_46, %c0_47] : memref<9x128xf32, #tpu.memory_space<vmem>>, vector<1x128xf32>
    %cst_48 = arith.constant dense<0.000000e+00> : vector<16x128xf32>
    %139 = tpu.matmul %133, %135, %cst_48 {dimension_numbers = #tpu.dot_dimension_numbers<[1], [0], [0], [1], [0, 0, 1, 1], [], []>} : vector<16x32xf32>, vector<32x128xf32>, vector<16x128xf32> -> vector<16x128xf32>
    %140 = vector.broadcast %138 : vector<1x128xf32> to vector<16x128xf32>
    %141 = arith.addf %139, %140 : vector<16x128xf32>
    %142 = vector.extract_strided_slice %141 {offsets = [0, 0], sizes = [8, 128], strides = [1, 1]} : vector<16x128xf32> to vector<8x128xf32>
    %143 = math.tanh %142 : vector<8x128xf32>
    %144 = arith.negf %142 : vector<8x128xf32>
    %145 = math.exp %144 : vector<8x128xf32>
    %cst_49 = arith.constant 1.000000e+00 : f32
    %146 = vector.broadcast %cst_49 : f32 to vector<8x128xf32>
    %147 = arith.addf %146, %145 : vector<8x128xf32>
    %148 = arith.divf %146, %147 : vector<8x128xf32>
    %149 = arith.select %49, %143, %148 : vector<8x128xi1>, vector<8x128xf32>
    %150 = vector.extract_strided_slice %149 {offsets = [0, 0], sizes = [8, 32], strides = [1, 1]} : vector<8x128xf32> to vector<8x32xf32>
    %151 = vector.extract_strided_slice %149 {offsets = [0, 64], sizes = [8, 32], strides = [1, 1]} : vector<8x128xf32> to vector<8x32xf32>
    %152 = vector.extract_strided_slice %149 {offsets = [0, 96], sizes = [8, 32], strides = [1, 1]} : vector<8x128xf32> to vector<8x32xf32>
    %153 = arith.mulf %150, %151 : vector<8x32xf32>
    %154 = math.tanh %153 : vector<8x32xf32>
    %155 = arith.mulf %152, %154 : vector<8x32xf32>
    %156 = vector.extract_strided_slice %141 {offsets = [8, 0], sizes = [8, 128], strides = [1, 1]} : vector<16x128xf32> to vector<8x128xf32>
    %cst_50 = arith.constant dense<0.000000e+00> : vector<8x128xf32>
    %157 = tpu.matmul %155, %137, %cst_50 {dimension_numbers = #tpu.dot_dimension_numbers<[1], [0], [0], [1], [0, 0, 1, 1], [], []>} : vector<8x32xf32>, vector<32x128xf32>, vector<8x128xf32> -> vector<8x128xf32>
    %158 = arith.addf %156, %157 : vector<8x128xf32>
    %159 = math.tanh %158 : vector<8x128xf32>
    %160 = arith.negf %158 : vector<8x128xf32>
    %161 = math.exp %160 : vector<8x128xf32>
    %cst_51 = arith.constant 1.000000e+00 : f32
    %162 = vector.broadcast %cst_51 : f32 to vector<8x128xf32>
    %163 = arith.addf %162, %161 : vector<8x128xf32>
    %164 = arith.divf %162, %163 : vector<8x128xf32>
    %165 = arith.select %49, %159, %164 : vector<8x128xi1>, vector<8x128xf32>
    %166 = vector.extract_strided_slice %165 {offsets = [0, 0], sizes = [8, 32], strides = [1, 1]} : vector<8x128xf32> to vector<8x32xf32>
    %167 = vector.extract_strided_slice %165 {offsets = [0, 32], sizes = [8, 32], strides = [1, 1]} : vector<8x128xf32> to vector<8x32xf32>
    %168 = vector.extract_strided_slice %165 {offsets = [0, 64], sizes = [8, 32], strides = [1, 1]} : vector<8x128xf32> to vector<8x32xf32>
    %169 = vector.extract_strided_slice %165 {offsets = [0, 96], sizes = [8, 32], strides = [1, 1]} : vector<8x128xf32> to vector<8x32xf32>
    %170 = arith.mulf %167, %153 : vector<8x32xf32>
    %171 = arith.mulf %166, %168 : vector<8x32xf32>
    %172 = arith.addf %170, %171 : vector<8x32xf32>
    %173 = math.tanh %172 : vector<8x32xf32>
    %174 = arith.mulf %169, %173 : vector<8x32xf32>
    %175 = tpu.concatenate %155, %174 in 0 : vector<8x32xf32>, vector<8x32xf32> -> vector<16x32xf32>
    %c128 = arith.constant 128 : index
    %c0_52 = arith.constant 0 : index
    %176 = vector.load %arg2[%c128, %c0_52] : memref<160x32xf32, #tpu.memory_space<vmem>>, vector<32x32xf32>
    %cst_53 = arith.constant dense<0.000000e+00> : vector<16x32xf32>
    %177 = tpu.matmul %175, %176, %cst_53 {dimension_numbers = #tpu.dot_dimension_numbers<[1], [0], [0], [1], [0, 0, 1, 1], [], []>} : vector<16x32xf32>, vector<32x32xf32>, vector<16x32xf32> -> vector<16x32xf32>
    %c7 = arith.constant 7 : index
    %c0_54 = arith.constant 0 : index
    %178 = vector.load %arg3[%c7, %c0_54] : memref<9x128xf32, #tpu.memory_space<vmem>>, vector<1x32xf32>
    %179 = vector.broadcast %178 : vector<1x32xf32> to vector<16x32xf32>
    %180 = arith.addf %177, %179 : vector<16x32xf32>
    %181 = math.tanh %180 : vector<16x32xf32>
    %c7_55 = arith.constant 7 : index
    %c0_56 = arith.constant 0 : index
    %c0_57 = arith.constant 0 : index
    %182 = vector.load %arg1[%c7_55, %c0_56, %c0_57] : memref<8x32x128xf32, #tpu.memory_space<vmem>>, vector<1x32x128xf32>
    %183 = vector.shape_cast %182 : vector<1x32x128xf32> to vector<32x128xf32>
    %cst_58 = arith.constant dense<0.000000e+00> : vector<16x128xf32>
    %184 = tpu.matmul %181, %183, %cst_58 {dimension_numbers = #tpu.dot_dimension_numbers<[1], [0], [0], [1], [0, 0, 1, 1], [], []>} : vector<16x32xf32>, vector<32x128xf32>, vector<16x128xf32> -> vector<16x128xf32>
    %c8 = arith.constant 8 : index
    %c0_59 = arith.constant 0 : index
    %185 = vector.load %arg3[%c8, %c0_59] : memref<9x128xf32, #tpu.memory_space<vmem>>, vector<1x128xf32>
    %186 = vector.broadcast %185 : vector<1x128xf32> to vector<16x128xf32>
    %187 = arith.addf %184, %186 : vector<16x128xf32>
    %c0_60 = arith.constant 0 : index
    %c0_61 = arith.constant 0 : index
    %188 = vector.load %arg4[%c0_60, %c0_61] : memref<16x128xf32, #tpu.memory_space<vmem>>, vector<16x128xf32>
    tpu.vector_store %arg4[%c0_60, %c0_61], %187 {strides = array<i32>} : memref<16x128xf32, #tpu.memory_space<vmem>>, vector<16x128xf32>,
    return
  }
}

</mosaic_0001>

<bundles_post_ra>
// kernel: pallas_forward.1
= control target key start
LH: loop header
LB: loop body
LE: loop exit
PB: predicated region body
PF: predicated region fallthrough
CT: control target
= control target key end

     0   :  { %vm30_vm0 = vcmask 261120   ;;  %s1547_s28 = smov 64   ;;  %s1548_s29 = smov 32   ;;  %vm1550_vm4 = vmmov 0   ;;  %s1850_s1 = inlined_call_operand.vmem [shape: f32[8,32,128], index: 1, kind: input, shape index: {}]   ;;  %s1851_s0 = inlined_call_operand.vmem [shape: f32[32,32], index: 0, kind: input, shape index: {}]   ;;  %s1852_s2 = inlined_call_operand.vmem [shape: f32[160,32], index: 2, kind: input, shape index: {}]   ;;  %s1853_s3 = inlined_call_operand.vmem [shape: f32[9,128], index: 3, kind: input, shape index: {}]   ;;  %s1854_s4 = inlined_call_operand.vmem [shape: f32[16,128], index: 4, kind: output, shape index: {}]  }
   0x1   :  { %v21_v0 = vld [vmem:[%s1850_s1] sm:$0xff]  ;;  %v22_v1 = vld [vmem:[%s1850_s1 + $0x8] sm:$0xff]  ;;  %v23_v2 = vld [vmem:[%s1850_s1 + $0x10] sm:$0xff]  ;;  %s1552_s12 = smov 96  }
   0x2   :  { %v1379_v3 = vpack.c.bf16 %v22_v1, %v21_v0  ;;  %v24_v4 = vld [vmem:[%s1850_s1 + $0x18] sm:$0xff]  ;;  %v19_v5 = vld [vmem:[%s1851_s0 + $0x10] sm:$0xff]  ;;  %v126_v8 = vld [vmem:[%s1852_s2] sm:$0xff] }
   0x3   :  { %v1383_v6 = vpack.c.bf16 %v24_v4, %v23_v2  ;;  %1253 = vmatprep.mubr.msk.f32.mxu0 %vm30_vm0, %v19_v5  ;;  %v20_v7 = vld [vmem:[%s1851_s0 + $0x18] sm:$0xff]  ;;  %v127_v9 = vld [vmem:[%s1852_s2 + $0x8] sm:$0xff]  ;;  %v128_v11 = vld [vmem:[%s1852_s2 + $0x10] sm:$0xff] }
   0x4   :  { %1380 = vmatprep.subr.bf16.mxu0 %v1379_v3  ;;  %v1387_v10 = vpack.c.bf16 %v127_v9, %v126_v8  ;;  %v129_v12 = vld [vmem:[%s1852_s2 + $0x18] sm:$0xff]  ;;  %v130_v14 = vld [vmem:[%s1852_s2 + $0x20] sm:$0xff]  ;;  %v131_v15 = vld [vmem:[%s1852_s2 + $0x28] sm:$0xff] }
   0x5   :  { %1382 = vmatpush3.bf16.msra.mxu0 %v1379_v3  ;;  %v1391_v13 = vpack.c.bf16 %v129_v12, %v128_v11  ;;  %v1395_v16 = vpack.c.bf16 %v131_v15, %v130_v14  ;;  %v132_v17 = vld [vmem:[%s1852_s2 + $0x30] sm:$0xff]  ;;  %v133_v18 = vld [vmem:[%s1852_s2 + $0x38] sm:$0xff]  ;;  %v134_v20 = vld [vmem:[%s1852_s2 + $0x40] sm:$0xff] }
   0x6   :  { %1384 = vmatprep.subr.bf16.mxu0 %v1383_v6  ;;  %1388 = vmatprep.subr.bf16.mxu1 %v1387_v10  ;;  %v1399_v19 = vpack.c.bf16 %v133_v18, %v132_v17  ;;  %v135_v21 = vld [vmem:[%s1852_s2 + $0x48] sm:$0xff]  ;;  %v136_v23 = vld [vmem:[%s1852_s2 + $0x50] sm:$0xff]  ;;  %v137_v24 = vld [vmem:[%s1852_s2 + $0x58] sm:$0xff] }
   0x7   :  { %1390 = vmatpush3.bf16.msra.mxu1 %v1387_v10  ;;  %v1403_v22 = vpack.c.bf16 %v135_v21, %v134_v20  ;;  %v1407_v25 = vpack.c.bf16 %v137_v24, %v136_v23  ;;  %v138_v26 = vld [vmem:[%s1852_s2 + $0x60] sm:$0xff]  ;;  %v139_v27 = vld [vmem:[%s1852_s2 + $0x68] sm:$0xff]  ;;  %v140_v29 = vld [vmem:[%s1852_s2 + $0x70] sm:$0xff] }
   0x8   :  { %1392 = vmatprep.subr.bf16.mxu1 %v1391_v13  ;;  %v1411_v28 = vpack.c.bf16 %v139_v27, %v138_v26  ;;  %v141_v30 = vld [vmem:[%s1852_s2 + $0x78] sm:$0xff]  ;;  %v1116_v32 = vld [vmem:[%s1853_s3] ss:$0 sm:$0xff]  ;;  %v1121_v47 = vld [vmem:[%s1853_s3 + $0x1] ss:$0 sm:$0xff] }
   0x9   :  { %1386 = vmatpush3.bf16.msra.mxu0 %v1383_v6  ;;  %v1415_v31 = vpack.c.bf16 %v141_v30, %v140_v29  ;;  %v17_v50 = vld [vmem:[%s1851_s0] sm:$0xff]  ;;  %v18_v53 = vld [vmem:[%s1851_s0 + $0x8] sm:$0xff]  ;;  %v1127_v8 = vld [vmem:[%s1850_s1 + $0x38] sm:$0xff] }
   0xa   :  { %v1124_v4 = vld [vmem:[%s1850_s1 + $0x20] sm:$0xff]  ;;  %v1125_v5 = vld [vmem:[%s1850_s1 + $0x28] sm:$0xff] }
   0xb   :  { %1394 = vmatpush3.bf16.msra.mxu1 %v1391_v13  ;;  %v1419_v6 = vpack.c.bf16 %v1125_v5, %v1124_v4  ;;  %v1122_v17 = vld [vmem:[%s1853_s3 + $0x2] ss:$0 sm:$0xff]  ;;  %v1132_v26 = vld [vmem:[%s1853_s3 + $0x4] ss:$0 sm:$0xff] }
   0xc   :  { %1254 = vmatmul.mubr.msk.f32.vlgmr.msra.gmra.mrb[0].mxu0 %vm30_vm0, %v20_v7  ;;  %1396 = vmatprep.subr.bf16.mxu1 %v1395_v16  ;;  %v1126_v7 = vld [vmem:[%s1850_s1 + $0x30] sm:$0xff]  ;;  %v1138_v5 = vld [vmem:[%s1850_s1 + $0x60] sm:$0xff] }
   0xd   :  { %1420 = vmatprep.subr.bf16.mxu0 %v1419_v6  ;;  %v1423_v9 = vpack.c.bf16 %v1127_v8, %v1126_v7  ;;  %v1140_v7 = vld [vmem:[%s1850_s1 + $0x70] sm:$0xff] }
   0xe   :  { %1422 = vmatpush3.bf16.msra.mxu0 %v1419_v6  ;;  %v1139_v6 = vld [vmem:[%s1850_s1 + $0x68] sm:$0xff] }
   0xf   :  { %1398 = vmatpush3.bf16.msra.mxu1 %v1395_v16  ;;  %1424 = vmatprep.subr.bf16.mxu0 %v1423_v9  ;;  %v1433_v8 = vpack.c.bf16 %v1139_v6, %v1138_v5 }
  0x10   :  { %1400 = vmatprep.subr.bf16.mxu1 %v1399_v19 }
  0x12   :  { %1426 = vmatpush3.bf16.msra.mxu0 %v1423_v9  ;;  %v1141_v9 = vld [vmem:[%s1850_s1 + $0x78] sm:$0xff] }
  0x13   :  { %1402 = vmatpush3.bf16.msra.mxu1 %v1399_v19  ;;  %v1123_v19 = vld [vmem:[%s1853_s3 + $0x3] ss:$0 sm:$0xff] }
  0x14   :  { %1404 = vmatprep.subr.bf16.mxu1 %v1403_v22 }
  0x17   :  { %1406 = vmatpush3.bf16.msra.mxu1 %v1403_v22 }
  0x18   :  { %1408 = vmatprep.subr.bf16.mxu1 %v1407_v25 }
  0x1b   :  { %1410 = vmatpush3.bf16.msra.mxu1 %v1407_v25 }
  0x1c   :  { %1412 = vmatprep.subr.bf16.mxu1 %v1411_v28 }
  0x1f   :  { %1414 = vmatpush3.bf16.msra.mxu1 %v1411_v28 }
  0x20   :  { %1416 = vmatprep.subr.bf16.mxu1 %v1415_v31 }
  0x23   :  { %1418 = vmatpush3.bf16.msra.mxu1 %v1415_v31 }
  0xdf   :  { %v1255_v33 = vpop.f32.mrb[0].mxu0 }
  0xe0   :  { %v109_v34 = vadd.f32 %v1255_v33, %v1116_v32  ;;  %v103_v35 = vpop.f32.mrb[1].mxu0  ;;  %v265_v33 = vlaneseq }
  0xe1   :  { %v104_v36 = vadd.f32 %v1116_v32, %v103_v35 }
  0xe2   :  { %v1120_v37 = vmul.f32 -1.442695, %v109_v34  ;;  %v266_v35 = vand.u32 127, %v265_v33 }
  0xe3   :  { %v1119_v38 = vmul.f32 -1.442695, %v104_v36 }
  0xe4   :  { %1483 = vpow2.f32 %v1120_v37  ;;  %vm267_vm1 = vcmp.ge.s32.totalorder %v266_v35, 64  ;;  %vm268_vm2 = vcmp.lt.s32.totalorder %v266_v35, 96 }
  0xe5   :  { %1485 = vpow2.f32 %v1119_v38  ;;  %vm1685_vm3 = vmand %vm267_vm1, %vm268_vm2 }
  0xee   :  { %v1484_v39 = vpop.eup %1483 }
  0xef   :  { %v1486_v40 = vpop.eup %1485  ;;  %v119_v41 = vadd.f32 1.0, %v1484_v39 }
  0xf0   :  { %v118_v42 = vadd.f32 1.0, %v1486_v40 }
  0xf1   :  { %1487 = vrcp.f32 %v119_v41 }
  0xf2   :  { %1489 = vrcp.f32 %v118_v42  ;;  %v1128_v42 = vld [vmem:[%s1850_s1 + $0x40] sm:$0xff] }
  0xfb   :  { %v1488_v43 = vpop.eup %1487 }
  0xfc   :  { %v1490_v44 = vpop.eup %1489  ;;  %v125_v46 = vmul.f32 %v1488_v43, %v109_v34  ;;  %v1129_v43 = vld [vmem:[%s1850_s1 + $0x48] sm:$0xff] }
  0xfd   :  { %v124_v45 = vmul.f32 %v1490_v44, %v104_v36  ;;  %v1130_v44 = vld [vmem:[%s1850_s1 + $0x50] sm:$0xff]  ;;  %v929_v36 = vld [vmem:[%s1852_s2 + $0x88] sm:$0xff] }
  0xff   :  { %1288 = vmatprep.mubr.f32.mxu1 %v124_v45  ;;  %v1549_v45 = vmov 0.0|0.0  }
 0x100   :  { %1289 = vmatmul.mubr.f32.vlgmr.msra.gmra.mrb[0].mxu1 %v125_v46  ;;  %1427 = vmatprep.subr.bf16.mxu0 %v1549_v45  ;;  %v1428_v46 = vpack.c.bf16 %v1129_v43, %v1128_v42 }
 0x1d3   :  { %v1290_v48 = vpop.f32.mrb[0].mxu1 }
 0x1d4   :  { %v213_v49 = vpop.f32.mrb[1].mxu1  ;;  %v219_v51 = vadd.f32 %v1290_v48, %v1121_v47  ;;  %v1551_v48 = vmov 0.0  }
 0x1d5   :  { %v214_v52 = vadd.f32 %v1121_v47, %v213_v49  ;;  %v1131_v47 = vld [vmem:[%s1850_s1 + $0x58] sm:$0xff] }
 0x1d6   :  { %v223_v56 = vadd.f32 %v219_v51, %v18_v53  ;;  %v1431_v49 = vpack.c.bf16 %v1131_v47, %v1130_v44 }
 0x1d7   :  { %v222_v54 = vadd.f32 %v214_v52, %v17_v50 }
 0x1d8   :  { %v227_v57 = vsel %vm30_vm0, %v223_v56, 0.0 }
 0x1d9   :  { %v224_v55 = vsel %vm30_vm0, %v222_v54, 0.0 }
 0x1da   :  { %225 = vadd.xlane.f32.xlu0 %v224_v55 }
 0x1de   :  { %228 = vadd.xlane.f32.xlu0 %v227_v57 }
 0x267   :  { %v226_v58 = vpop.xlane.xlu0 %225 }
 0x268   :  { %v231_v59 = vmul.f32 0.03125, %v226_v58 }
 0x26a   :  { %v233_v60 = vsub.f32 %v222_v54, %v231_v59 }
 0x26b   :  { %v229_v61 = vpop.xlane.xlu0 %228 }
 0x26c   :  { %v232_v62 = vmul.f32 0.03125, %v229_v61  ;;  %v235_v63 = vmul.f32 %v233_v60, %v233_v60 }
 0x26e   :  { %v234_v0 = vsub.f32 %v223_v56, %v232_v62  ;;  %v237_v1 = vsel %vm30_vm0, %v235_v63, 0.0 }
 0x26f   :  { %238 = vadd.xlane.f32.xlu1 %v237_v1 }
 0x270   :  { %v236_v2 = vmul.f32 %v234_v0, %v234_v0 }
 0x272   :  { %v240_v3 = vsel %vm30_vm0, %v236_v2, 0.0 }
 0x273   :  { %241 = vadd.xlane.f32.xlu1 %v240_v3 }
 0x2fc   :  { %v239_v10 = vpop.xlane.xlu1 %238 }
 0x2fd   :  { %v243_v11 = vmul.f32 0.03125, %v239_v10  ;;  %v1437_v10 = vpack.c.bf16 %v1141_v9, %v1140_v7 }
 0x2ff   :  { %v245_v12 = vadd.f32 1e-06, %v243_v11 }
 0x300   :  { %v242_v13 = vpop.xlane.xlu1 %241 }
 0x301   :  { %1491 = vrsqrt.f32 %v245_v12  ;;  %v244_v14 = vmul.f32 0.03125, %v242_v13 }
 0x303   :  { %v246_v15 = vadd.f32 1e-06, %v244_v14 }
 0x305   :  { %1493 = vrsqrt.f32 %v246_v15  ;;  %v1146_v15 = vld [vmem:[%s1853_s3 + $0x5] ss:$0 sm:$0xff] }
 0x30b   :  { %v1492_v16 = vpop.eup %1491 }
 0x30c   :  { %v249_v18 = vmul.f32 %v1492_v16, %v233_v60 }
 0x30e   :  { %v256_v20 = vmul.f32 %v1122_v17, %v249_v18 }
 0x30f   :  { %v1494_v21 = vpop.eup %1493 }
 0x310   :  { %v250_v22 = vmul.f32 %v1494_v21, %v234_v0  ;;  %v263_v23 = vadd.f32 %v1123_v19, %v256_v20 }
 0x312   :  { %v257_v24 = vmul.f32 %v1122_v17, %v250_v22  ;;  %1299 = vmatprep.mubr.msk.f32.mxu0 %vm30_vm0, %v263_v23 }
 0x314   :  { %v264_v25 = vadd.f32 %v1123_v19, %v257_v24 }
 0x316   :  { %1300 = vmatmul.mubr.msk.f32.vlgmr.msra.gmra.mrb[2].mxu0 %vm30_vm0, %v264_v25 }
 0x317   :  { %1310 = vmatprep.mubr.msk.f32.mxu0 %vm1550_vm4, %v1551_v48  ;;  %1429 = vmatpush3.bf16.msra.mxu0 %v1428_v46 }
 0x318   :  { %1430 = vmatprep.subr.bf16.mxu0 %v1549_v45 }
 0x31b   :  { %1432 = vmatpush3.bf16.msra.mxu0 %v1431_v49 }
 0x31c   :  { %1434 = vmatprep.subr.bf16.mxu0 %v1433_v8 }
 0x3e9   :  { %v1301_v27 = vpop.f32.mrb[2].mxu0 }
 0x3ea   :  { %v363_v28 = vadd.f32 %v1301_v27, %v1132_v26  ;;  %v357_v29 = vpop.f32.mrb[3].mxu0 }
 0x3eb   :  { %v358_v30 = vadd.f32 %v1132_v26, %v357_v29  ;;  %v1143_v29 = vld [vmem:[%s1850_s1 + $0x88] sm:$0xff] }
 0x3ed   :  { %v1135_v31 = vmul.f32 -1.442695, %v358_v30 }
 0x3ef   :  { %1495 = vpow2.f32 %v1135_v31 }
 0x3f0   :  { %1497 = vtanh.f32 %v358_v30  ;;  %v1144_v30 = vld [vmem:[%s1850_s1 + $0x90] sm:$0xff] }
 0x3f9   :  { %v1496_v32 = vpop.eup %1495 }
 0x3fa   :  { %v370_v34 = vadd.f32 1.0, %v1496_v32  ;;  %v1498_v37 = vpop.eup %1497  ;;  %v1145_v32 = vld [vmem:[%s1850_s1 + $0x98] sm:$0xff] }
 0x3fb   :  { %v1445_v33 = vpack.c.bf16 %v1145_v32, %v1144_v30 }
 0x3fc   :  { %1499 = vrcp.f32 %v370_v34 }
 0x406   :  { %v1500_v38 = vpop.eup %1499 }
 0x407   :  { %v373_v39 = vsel %vm1685_vm3, %v1498_v37, %v1500_v38 }
 0x408   :  { %375 = vrot.lane.b32.xlu0 %v373_v39, %s1547_s28 }
 0x47a   :  { %v376_v40 = vpop.permute.xlu0 %375 }
 0x47b   :  { %v378_v41 = vmul.f32 %v376_v40, %v373_v39 }
 0x47d   :  { %1501 = vtanh.f32 %v378_v41  ;;  %470 = vrot.lane.b32.xlu0 %v378_v41, %s1548_s29 }
 0x487   :  { %v1502_v50 = vpop.eup %1501 }
 0x488   :  { %381 = vrot.lane.b32.xlu1 %v1502_v50, %s1552_s12 }
 0x4ef   :  { %v471_v1 = vpop.permute.xlu0 %470 }
 0x4fa   :  { %v382_v51 = vpop.permute.xlu1 %381 }
 0x4fb   :  { %v384_v52 = vmul.f32 %v382_v51, %v373_v39 }
 0x4fd   :  { %386 = vrot.lane.b32.xlu1 %v384_v52, %s1548_s29 }
 0x56f   :  { %v387_v53 = vpop.permute.xlu1 %386 }
 0x570   :  { %1311 = vmatmul.mubr.msk.f32.vlgmr.msra.gmra.mrb[4].mxu0 %vm30_vm0, %v387_v53 }
 0x571   :  { %1321 = vmatprep.mubr.msk.f32.mxu0 %vm30_vm0, %v387_v53  ;;  %1436 = vmatpush3.bf16.msra.mxu0 %v1433_v8 }
 0x572   :  { %1438 = vmatprep.subr.bf16.mxu0 %v1437_v10 }
 0x575   :  { %1440 = vmatpush3.bf16.msra.mxu0 %v1437_v10 }
 0x576   :  { %1441 = vmatprep.subr.bf16.mxu0 %v1549_v45 }
 0x643   :  { %v456_v54 = vpop.f32.mrb[4].mxu0 }
 0x644   :  { %v460_v55 = vadd.f32 %v456_v54, %v363_v28  ;;  %v1312_v56 = vpop.f32.mrb[5].mxu0  ;;  %v1142_v28 = vld [vmem:[%s1850_s1 + $0x80] sm:$0xff] }
 0x645   :  { %v1442_v31 = vpack.c.bf16 %v1143_v29, %v1142_v28  ;;  %v1153_v56 = vld [vmem:[%s1850_s1 + $0xa8] sm:$0xff] }
 0x646   :  { %v1137_v57 = vmul.f32 -1.442695, %v460_v55 }
 0x648   :  { %1503 = vpow2.f32 %v1137_v57  ;;  %v1154_v57 = vld [vmem:[%s1850_s1 + $0xb0] sm:$0xff] }
 0x649   :  { %1505 = vtanh.f32 %v460_v55  ;;  %v1152_v55 = vld [vmem:[%s1850_s1 + $0xa0] sm:$0xff] }
 0x652   :  { %v1504_v58 = vpop.eup %1503 }
 0x653   :  { %v465_v59 = vadd.f32 1.0, %v1504_v58  ;;  %v1506_v60 = vpop.eup %1505  ;;  %v1447_v58 = vpack.c.bf16 %v1153_v56, %v1152_v55  ;;  %v1166_v55 = vld [vmem:[%s1853_s3 + $0x7] ss:$0 sm:$0xff] }
 0x655   :  { %1507 = vrcp.f32 %v465_v59  ;;  %v1155_v59 = vld [vmem:[%s1850_s1 + $0xb8] sm:$0xff]  ;;  %1448 = vmatprep.subr.bf16.mxu1 %v1447_v58 }
 0x656   :  { %1450 = vmatpush3.bf16.msra.mxu1 %v1447_v58 }
 0x65f   :  { %v1508_v61 = vpop.eup %1507 }
 0x660   :  { %v468_v62 = vsel %vm1685_vm3, %v1506_v60, %v1508_v61  ;;  %v1451_v60 = vpack.c.bf16 %v1155_v59, %v1154_v57 }
 0x661   :  { %475 = vrot.lane.b32.xlu1 %v468_v62, %s1547_s28  ;;  %v473_v2 = vmul.f32 %v471_v1, %v468_v62  ;;  %v1160_v1 = vld [vmem:[%s1853_s3 + $0x6] ss:$0 sm:$0xff] }
 0x662   :  { %1452 = vmatprep.subr.bf16.mxu1 %v1451_v60 }
 0x663   :  { %1454 = vmatpush3.bf16.msra.mxu1 %v1451_v60 }
 0x6d3   :  { %v476_v63 = vpop.permute.xlu1 %475 }
 0x6d4   :  { %v478_v0 = vmul.f32 %v476_v63, %v468_v62 }
 0x6d6   :  { %480 = vrot.lane.b32.xlu1 %v478_v0, %s1548_s29 }
 0x748   :  { %v481_v3 = vpop.permute.xlu1 %480 }
 0x749   :  { %v483_v4 = vadd.f32 %v481_v3, %v473_v2 }
 0x74b   :  { %1509 = vtanh.f32 %v483_v4 }
 0x755   :  { %v1510_v11 = vpop.eup %1509 }
 0x756   :  { %486 = vrot.lane.b32.xlu0 %v1510_v11, %s1547_s28 }
 0x7c8   :  { %v487_v12 = vpop.permute.xlu0 %486 }
 0x7c9   :  { %v489_v13 = vmul.f32 %v487_v12, %v468_v62 }
 0x7cb   :  { %506 = vrot.lane.b32.xlu1 %v489_v13, %s1548_s29 }
 0x83d   :  { %v507_v14 = vpop.permute.xlu1 %506 }
 0x83e   :  { %1322 = vmatmul.mubr.msk.f32.vlgmr.msra.gmra.mrb[6].mxu0 %vm30_vm0, %v507_v14  ;;  %v1156_v14 = vld [vmem:[%s1850_s1 + $0xc0] sm:$0xff] }
 0x83f   :  { %1332 = vmatprep.mubr.msk.f32.mxu0 %vm1550_vm4, %v1551_v48  ;;  %1443 = vmatpush3.bf16.msra.mxu0 %v1442_v31 }
 0x840   :  { %1444 = vmatprep.subr.bf16.mxu0 %v1549_v45 }
 0x843   :  { %1446 = vmatpush3.bf16.msra.mxu0 %v1445_v33 }
 0x844   :  { %1455 = vmatprep.subr.bf16.mxu0 %v1549_v45 }
 0x911   :  { %v1323_v16 = vpop.f32.mrb[6].mxu0 }
 0x912   :  { %v582_v17 = vadd.f32 %v1323_v16, %v1146_v15  ;;  %v576_v18 = vpop.f32.mrb[7].mxu0  ;;  %v1158_v16 = vld [vmem:[%s1850_s1 + $0xd0] sm:$0xff] }
 0x913   :  { %v577_v19 = vadd.f32 %v1146_v15, %v576_v18  ;;  %v1157_v15 = vld [vmem:[%s1850_s1 + $0xc8] sm:$0xff]  ;;  %v1159_v18 = vld [vmem:[%s1850_s1 + $0xd8] sm:$0xff] }
 0x915   :  { %v1149_v20 = vmul.f32 -1.442695, %v577_v19 }
 0x917   :  { %1511 = vpow2.f32 %v1149_v20 }
 0x918   :  { %1513 = vtanh.f32 %v577_v19  ;;  %v1459_v19 = vpack.c.bf16 %v1159_v18, %v1158_v16 }
 0x921   :  { %v1512_v21 = vpop.eup %1511 }
 0x922   :  { %v589_v22 = vadd.f32 1.0, %v1512_v21  ;;  %v1514_v23 = vpop.eup %1513 }
 0x924   :  { %1515 = vrcp.f32 %v589_v22 }
 0x92e   :  { %v1516_v24 = vpop.eup %1515 }
 0x92f   :  { %v592_v25 = vsel %vm1685_vm3, %v1514_v23, %v1516_v24 }
 0x930   :  { %594 = vrot.lane.b32.xlu0 %v592_v25, %s1547_s28 }
 0x9a2   :  { %v595_v26 = vpop.permute.xlu0 %594 }
 0x9a3   :  { %v597_v27 = vmul.f32 %v595_v26, %v592_v25 }
 0x9a5   :  { %1517 = vtanh.f32 %v597_v27 }
 0x9af   :  { %v1518_v34 = vpop.eup %1517 }
 0x9b0   :  { %600 = vrot.lane.b32.xlu1 %v1518_v34, %s1552_s12 }
 0xa22   :  { %v601_v35 = vpop.permute.xlu1 %600 }
 0xa23   :  { %v603_v37 = vmul.f32 %v601_v35, %v592_v25 }
 0xa25   :  { %605 = vrot.lane.b32.xlu0 %v603_v37, %s1548_s29 }
 0xa29   :  { %689 = vrot.lane.b32.xlu0 %v597_v27, %s1548_s29 }
 0xa97   :  { %v606_v38 = vpop.permute.xlu0 %605 }
 0xa98   :  { %1333 = vmatmul.mubr.msk.f32.vlgmr.msra.gmra.mrb[8].mxu0 %vm30_vm0, %v606_v38  ;;  %1343 = vmatprep.mubr.msk.f32.mxu1 %vm30_vm0, %v606_v38 }
 0xa99   :  { %1354 = vmatprep.mubr.msk.f32.mxu0 %vm1550_vm4, %v1551_v48 }
 0xa9b   :  { %v690_v48 = vpop.permute.xlu0 %689 }
 0xb6b   :  { %v675_v39 = vpop.f32.mrb[8].mxu0 }
 0xb6c   :  { %v679_v40 = vadd.f32 %v675_v39, %v582_v17  ;;  %v1334_v41 = vpop.f32.mrb[9].mxu0  ;;  %v1456_v17 = vpack.c.bf16 %v1157_v15, %v1156_v14  ;;  %v928_v39 = vld [vmem:[%s1852_s2 + $0x80] sm:$0xff] }
 0xb6d   :  { %v1461_v41 = vpack.c.bf16 %v929_v36, %v928_v39 }
 0xb6e   :  { %v1151_v42 = vmul.f32 -1.442695, %v679_v40  ;;  %1457 = vmatpush3.bf16.msra.mxu0 %v1456_v17 }
 0xb6f   :  { %1458 = vmatprep.subr.bf16.mxu0 %v1549_v45  ;;  %1462 = vmatprep.subr.bf16.mxu1 %v1461_v41 }
 0xb70   :  { %1519 = vpow2.f32 %v1151_v42  ;;  %v931_v42 = vld [vmem:[%s1852_s2 + $0x98] sm:$0xff] }
 0xb71   :  { %1521 = vtanh.f32 %v679_v40  ;;  %v930_v40 = vld [vmem:[%s1852_s2 + $0x90] sm:$0xff] }
 0xb72   :  { %1460 = vmatpush3.bf16.msra.mxu0 %v1459_v19 }
 0xb7a   :  { %v1520_v43 = vpop.eup %1519 }
 0xb7b   :  { %v684_v44 = vadd.f32 1.0, %v1520_v43  ;;  %v1522_v46 = vpop.eup %1521  ;;  %v1465_v43 = vpack.c.bf16 %v931_v42, %v930_v40 }
 0xb7d   :  { %1523 = vrcp.f32 %v684_v44 }
 0xb87   :  { %v1524_v47 = vpop.eup %1523 }
 0xb88   :  { %v687_v49 = vsel %vm1685_vm3, %v1522_v46, %v1524_v47 }
 0xb89   :  { %694 = vrot.lane.b32.xlu1 %v687_v49, %s1547_s28  ;;  %v692_v52 = vmul.f32 %v690_v48, %v687_v49  ;;  %v1171_v48 = vld [vmem:[%s1850_s1 + $0xf0] sm:$0xff] }
 0xbfb   :  { %v695_v50 = vpop.permute.xlu1 %694 }
 0xbfc   :  { %v697_v51 = vmul.f32 %v695_v50, %v687_v49  ;;  %v1169_v50 = vld [vmem:[%s1850_s1 + $0xe0] sm:$0xff] }
 0xbfe   :  { %699 = vrot.lane.b32.xlu1 %v697_v51, %s1548_s29  ;;  %v1170_v51 = vld [vmem:[%s1850_s1 + $0xe8] sm:$0xff] }
 0xc70   :  { %v700_v53 = vpop.permute.xlu1 %699 }
 0xc71   :  { %v702_v54 = vadd.f32 %v700_v53, %v692_v52  ;;  %v1469_v52 = vpack.c.bf16 %v1170_v51, %v1169_v50  ;;  %v1172_v53 = vld [vmem:[%s1850_s1 + $0xf8] sm:$0xff] }
 0xc73   :  { %1525 = vtanh.f32 %v702_v54  ;;  %v1473_v54 = vpack.c.bf16 %v1172_v53, %v1171_v48  ;;  %1470 = vmatprep.subr.bf16.mxu0 %v1469_v52 }
 0xc7d   :  { %v1526_v61 = vpop.eup %1525 }
 0xc7e   :  { %705 = vrot.lane.b32.xlu0 %v1526_v61, %s1547_s28 }
 0xcf0   :  { %v706_v62 = vpop.permute.xlu0 %705 }
 0xcf1   :  { %v708_v63 = vmul.f32 %v706_v62, %v687_v49  ;;  %v1173_v62 = vld [vmem:[%s1853_s3 + $0x8] ss:$0 sm:$0xff] }
 0xcf3   :  { %725 = vrot.lane.b32.xlu1 %v708_v63, %s1548_s29 }
 0xd65   :  { %v726_v0 = vpop.permute.xlu1 %725 }
 0xd66   :  { %1344 = vmatmul.mubr.msk.f32.vlgmr.msra.gmra.mrb[2].mxu1 %vm30_vm0, %v726_v0 }
 0xd67   :  { %1464 = vmatpush3.bf16.msra.mxu1 %v1461_v41 }
 0xd68   :  { %1466 = vmatprep.subr.bf16.mxu1 %v1465_v43 }
 0xd6b   :  { %1468 = vmatpush3.bf16.msra.mxu1 %v1465_v43 }
 0xe39   :  { %v1345_v2 = vpop.f32.mrb[2].mxu1 }
 0xe3a   :  { %v801_v3 = vadd.f32 %v1345_v2, %v1160_v1  ;;  %v795_v4 = vpop.f32.mrb[3].mxu1 }
 0xe3b   :  { %v796_v5 = vadd.f32 %v1160_v1, %v795_v4 }
 0xe3d   :  { %v1163_v6 = vmul.f32 -1.442695, %v796_v5 }
 0xe3f   :  { %1527 = vpow2.f32 %v1163_v6 }
 0xe40   :  { %1529 = vtanh.f32 %v796_v5 }
 0xe49   :  { %v1528_v7 = vpop.eup %1527 }
 0xe4a   :  { %v808_v8 = vadd.f32 1.0, %v1528_v7  ;;  %v1530_v9 = vpop.eup %1529 }
 0xe4c   :  { %1531 = vrcp.f32 %v808_v8 }
 0xe56   :  { %v1532_v10 = vpop.eup %1531 }
 0xe57   :  { %v811_v11 = vsel %vm1685_vm3, %v1530_v9, %v1532_v10 }
 0xe58   :  { %813 = vrot.lane.b32.xlu0 %v811_v11, %s1547_s28 }
 0xeca   :  { %v814_v12 = vpop.permute.xlu0 %813 }
 0xecb   :  { %v816_v13 = vmul.f32 %v814_v12, %v811_v11 }
 0xecd   :  { %1533 = vtanh.f32 %v816_v13 }
 0xed7   :  { %v1534_v20 = vpop.eup %1533 }
 0xed8   :  { %819 = vrot.lane.b32.xlu1 %v1534_v20, %s1552_s12 }
 0xf4a   :  { %v820_v21 = vpop.permute.xlu1 %819 }
 0xf4b   :  { %v822_v22 = vmul.f32 %v820_v21, %v811_v11 }
 0xf4d   :  { %824 = vrot.lane.b32.xlu0 %v822_v22, %s1548_s29 }
 0xf51   :  { %908 = vrot.lane.b32.xlu0 %v816_v13, %s1548_s29 }
 0xfbf   :  { %v825_v23 = vpop.permute.xlu0 %824 }
 0xfc0   :  { %1355 = vmatmul.mubr.msk.f32.vlgmr.msra.gmra.mrb[10].mxu0 %vm30_vm0, %v825_v23  ;;  %1365 = vmatprep.mubr.msk.f32.mxu1 %vm30_vm0, %v825_v23 }
 0xfc1   :  { %1472 = vmatpush3.bf16.msra.mxu0 %v1469_v52 }
 0xfc2   :  { %1474 = vmatprep.subr.bf16.mxu0 %v1473_v54 }
 0xfc3   :  { %v909_v34 = vpop.permute.xlu0 %908 }
 0xfc5   :  { %1476 = vmatpush3.bf16.msra.mxu0 %v1473_v54 }
0x1093   :  { %v894_v24 = vpop.f32.mrb[10].mxu0 }
0x1094   :  { %v898_v25 = vadd.f32 %v894_v24, %v801_v3  ;;  %v1356_v26 = vpop.f32.mrb[11].mxu0 }
0x1096   :  { %v1165_v27 = vmul.f32 -1.442695, %v898_v25 }
0x1098   :  { %1535 = vpow2.f32 %v1165_v27 }
0x1099   :  { %1537 = vtanh.f32 %v898_v25 }
0x10a2   :  { %v1536_v45 = vpop.eup %1535 }
0x10a3   :  { %v903_v28 = vadd.f32 1.0, %v1536_v45  ;;  %v1538_v29 = vpop.eup %1537 }
0x10a5   :  { %1539 = vrcp.f32 %v903_v28 }
0x10af   :  { %v1540_v30 = vpop.eup %1539 }
0x10b0   :  { %v906_v31 = vsel %vm1685_vm3, %v1538_v29, %v1540_v30 }
0x10b1   :  { %913 = vrot.lane.b32.xlu1 %v906_v31, %s1547_s28  ;;  %v911_v35 = vmul.f32 %v909_v34, %v906_v31 }
0x1123   :  { %v914_v32 = vpop.permute.xlu1 %913 }
0x1124   :  { %v916_v33 = vmul.f32 %v914_v32, %v906_v31 }
0x1126   :  { %918 = vrot.lane.b32.xlu1 %v916_v33, %s1548_s29 }
0x1198   :  { %v919_v37 = vpop.permute.xlu1 %918 }
0x1199   :  { %v921_v38 = vadd.f32 %v919_v37, %v911_v35 }
0x119b   :  { %1541 = vtanh.f32 %v921_v38 }
0x11a5   :  { %v1542_v44 = vpop.eup %1541 }
0x11a6   :  { %924 = vrot.lane.b32.xlu0 %v1542_v44, %s1547_s28 }
0x1218   :  { %v925_v46 = vpop.permute.xlu0 %924 }
0x1219   :  { %v927_v47 = vmul.f32 %v925_v46, %v906_v31 }
0x121b   :  { %938 = vrot.lane.b32.xlu1 %v927_v47, %s1548_s29 }
0x128d   :  { %v939_v49 = vpop.permute.xlu1 %938 }
0x128e   :  { %1366 = vmatmul.mubr.msk.f32.vlgmr.msra.gmra.mrb[4].mxu1 %vm30_vm0, %v939_v49 }
0x1361   :  { %v1367_v56 = vpop.f32.mrb[4].mxu1 }
0x1362   :  { %v1014_v57 = vadd.f32 %v1367_v56, %v1166_v55  ;;  %v1008_v58 = vpop.f32.mrb[5].mxu1 }
0x1363   :  { %v1009_v59 = vadd.f32 %v1166_v55, %v1008_v58 }
0x1365   :  { %1543 = vtanh.f32 %v1009_v59 }
0x1366   :  { %1545 = vtanh.f32 %v1014_v57 }
0x136f   :  { %v1544_v60 = vpop.eup %1543 }
0x1370   :  { %v1546_v61 = vpop.eup %1545  ;;  %1376 = vmatprep.mubr.msk.f32.mxu0 %vm30_vm0, %v1544_v60 }
0x1371   :  { %1377 = vmatmul.mubr.msk.f32.vlgmr.msra.gmra.mrb[12].mxu0 %vm30_vm0, %v1546_v61 }
0x1444   :  { %v1378_v63 = vpop.f32.mrb[12].mxu0 }
0x1445   :  { %v1107_v0 = vadd.f32 %v1378_v63, %v1173_v62  ;;  %v1101_v1 = vpop.f32.mrb[13].mxu0 }
0x1446   :  { %v1102_v2 = vadd.f32 %v1173_v62, %v1101_v1 }
0x1447   :  { %1111 = vst [vmem:[%s1854_s4 + $0x8] sm:$0xff] %v1107_v0 }
0x1448   :  { %1110 = vst [vmem:[%s1854_s4] sm:$0xff] %v1102_v2 }

</bundles_post_ra>
